<compile_context>
chip_gen: v7x
topology: tpu7x:2x2x1
jax: 0.10.0
libtpu: 0.0.40
codegen_flags: <defaults>
</compile_context>

<pallas_src>
import functools

import jax
import jax.numpy as jnp
from jax.experimental import pallas as pl
from jax.experimental.pallas import tpu as pltpu


def _round_up(x, m):
    return (x + m - 1) // m * m


def _vmem_budgets():
    """Generation-aware (tile-search budget, compiler VMEM limit) in bytes."""
    try:
        cap = int(pltpu.get_tpu_info().vmem_capacity_bytes)
    except Exception:
        cap = 64 * 1024 * 1024          # conservative (v7x-sized) fallback
    budget = min(max(cap * 3 // 8, 12 << 20), 48 << 20)   # 128MiB->48, 64MiB->24
    limit = min(max(cap * 3 // 4, 32 << 20), 96 << 20)    # 128MiB->96, 64MiB->48
    return budget, limit


# ---------------------------------------------------------------------------
# Phase 1: conv as K-folded shifted matmuls over an auto-pipelined row slab,
#          plus per-tile partial BatchNorm statistics (sum, sum of squares).
# ---------------------------------------------------------------------------
def _conv_stats_kernel(slab_ref, w_ref, conv_ref, stats_ref, acc_ref, *,
                       offsets, wp8, ow_valid):
    tile_m = conv_ref.shape[0]

    # Accumulate directly into one f32 VMEM scratch (no extra live acc arrays).
    acc_ref[...] = jnp.dot(slab_ref[pl.ds(offsets[0], tile_m), :], w_ref[0],
                           preferred_element_type=jnp.float32)
    for idx in range(1, len(offsets)):
        lhs = slab_ref[pl.ds(offsets[idx], tile_m), :]
        acc_ref[...] += jnp.dot(lhs, w_ref[idx],
                                preferred_element_type=jnp.float32)

    acc = acc_ref[...]                                    # (tile_m, cp) f32
    conv_ref[...] = acc.astype(conv_ref.dtype)            # bf16 intermediate

    # Per-channel partial sum / sum-of-squares over the *valid* width columns
    # only, done on the MXU (mask-row matmul) instead of a cross-sublane
    # XLU reduction.
    col = jax.lax.broadcasted_iota(jnp.int32, (1, tile_m), 1) % wp8
    mask = (col < ow_valid).astype(jnp.float32)            # (1, tile_m)
    psum = jnp.dot(mask, acc, preferred_element_type=jnp.float32)       # (1, cp)
    psq = jnp.dot(mask, acc * acc, preferred_element_type=jnp.float32)  # (1, cp)
    stats_ref[0] = jnp.concatenate([psum, psq], axis=0)    # (2, cp) partial


# ---------------------------------------------------------------------------
# Phase 2: y = conv * scale + shift ; LeakyReLU(0.1).  f32 math, big blocks.
# ---------------------------------------------------------------------------
def _bn_act_kernel(c_ref, scale_ref, shift_ref, o_ref, *, slope):
    y = c_ref[...].astype(jnp.float32) * scale_ref[...] + shift_ref[...]
    o_ref[...] = jnp.where(y > 0, y, slope * y).astype(o_ref.dtype)


# ---------------------------------------------------------------------------
# Wrapper
# ---------------------------------------------------------------------------
def cnn_block_forward(x, conv_w, bn_gamma, bn_beta, *, stride=1, padding=1,
                      eps=1e-5, slope=0.1, tile_oh=None,
                      compute_dtype=jnp.bfloat16,
                      interphase_dtype=jnp.bfloat16,
                      out_dtype=jnp.float32):
    """x: (N, Cin, H, W) NCHW.  conv_w: (Cout, Cin, KH, KW).  Returns NCHW."""
    if stride != 1:
        # TODO(synk): stride > 1 not fused (needs strided slab gathers).
        raise NotImplementedError("Pallas CNNBlock path supports stride=1 only")

    n, cin, h, w = x.shape
    cout, cin_w, kh, kw = conv_w.shape
    assert cin_w == cin

    oh = h + 2 * padding - kh + 1
    ow = w + 2 * padding - kw + 1
    hp = h + 2 * padding
    wp = w + 2 * padding
    wp8 = _round_up(wp, 8)              # sublane-friendly padded width
    # Lane-pad Cout only when large enough to amortize it; small Cout accepts
    # masked stores instead of up-to-16x padded HBM traffic.
    cp = _round_up(cout, 128) if cout >= 64 else cout

    comp_b = jnp.dtype(compute_dtype).itemsize
    inter_b = jnp.dtype(interphase_dtype).itemsize
    out_b = jnp.dtype(out_dtype).itemsize

    # Fold KW*Cin into the contraction when the folded K fits one vreg of lanes.
    fold = kw * cin <= 128
    kc = kw * cin if fold else cin
    kh_eff = kh if fold else kh * kw
    halo = kh - 1 if (fold or kw == 1) else kh     # extra padded image rows

    budget, vmem_limit = _vmem_budgets()

    def _phase1_need(cand_oh):
        t_m = cand_oh * wp8
        s_rows = (cand_oh + halo) * wp8
        return (2 * s_rows * kc * comp_b          # double-buffered input slab
                + 2 * kh_eff * kc * cp * comp_b   # weights (2 pipeline buffers)
                + 2 * t_m * cp * inter_b          # double-buffered conv output
                + 2 * 2 * cp * 4                  # partial-stats output
                + t_m * cp * 4                    # f32 accumulator scratch
                + 2 * t_m * cp * 4)               # acc / acc*acc temporaries

    if tile_oh is None:
        tile_oh = 1
        for cand in range(1, oh + 1):
            if oh % cand == 0 and _phase1_need(cand) <= budget:
                tile_oh = cand
    else:
        tile_oh = max(1, min(int(tile_oh), oh))
        while oh % tile_oh:
            tile_oh -= 1

    tiles_per_img = oh // tile_oh
    num_tiles = n * tiles_per_img
    tile_m = tile_oh * wp8
    slab_img_rows = tile_oh + halo
    slab_rows = slab_img_rows * wp8
    m_out = num_tiles * tile_m          # == n * oh * wp8

    # ---- layout plumbing (XLA glue, outside the kernels) -------------------
    x_nhwc = jnp.transpose(x, (0, 2, 3, 1)).astype(compute_dtype)
    x_pad = jnp.pad(x_nhwc, ((0, 0), (padding, padding),
                             (padding, padding + (wp8 - wp)), (0, 0)))
    if fold:
        # Fold KW into the channel axis: x_kc[m, j*Cin + c] = flat[m + j, c].
        flat_rows = n * hp * wp8
        x_rows = x_pad.reshape(flat_rows, cin)
        x_rows = jnp.pad(x_rows, ((0, kw - 1), (0, 0)))
        x_kc = jnp.concatenate(
            [x_rows[j:j + flat_rows, :] for j in range(kw)], axis=-1)
        x_img = x_kc.reshape(n, hp, wp8, kc)
    else:
        x_img = x_pad

    # Materialize the per-tile slabs (tile rows + halo rows).  Duplication is
    # only the halo (zero when tile_oh == oh).
    row_idx = (jnp.arange(tiles_per_img)[:, None] * tile_oh
               + jnp.arange(slab_img_rows)[None, :])
    row_idx = jnp.minimum(row_idx, hp - 1)
    x_slabs = x_img[:, row_idx].reshape(num_tiles * slab_rows, kc)

    # Conv weights -> (kh_eff, kc, cp), channel-padded, bf16.
    w_t = jnp.transpose(conv_w, (2, 3, 1, 0))            # (KH, KW, Cin, Cout)
    if fold:
        w_k = w_t.reshape(kh, kw * cin, cout)
        offsets = tuple(i * wp8 for i in range(kh))
    else:
        w_k = w_t.reshape(kh * kw, cin, cout)
        offsets = tuple(i * wp8 + j for i in range(kh) for j in range(kw))
    w_k = jnp.pad(w_k, ((0, 0), (0, 0), (0, cp - cout))).astype(compute_dtype)

    # ---- phase 1: conv tiles + per-tile partial BN statistics --------------
    conv_kernel = functools.partial(_conv_stats_kernel, offsets=offsets,
                                    wp8=wp8, ow_valid=ow)
    p1_cost = pl.CostEstimate(
        flops=int(2 * m_out * kc * cp * kh_eff + 4 * m_out * cp),
        transcendentals=0,
        bytes_accessed=int(x_slabs.size * comp_b + w_k.size * comp_b
                           + m_out * cp * inter_b + num_tiles * 2 * cp * 4))

    # The weights use a constant index_map, so the pipeline only fetches them
    # once; the second (idle) pipeline buffer is counted in the VMEM budget.
    conv_flat, stat_parts = pl.pallas_call(
        conv_kernel,
        out_shape=(jax.ShapeDtypeStruct((m_out, cp), interphase_dtype),
                   jax.ShapeDtypeStruct((num_tiles, 2, cp), jnp.float32)),
        grid=(num_tiles,),
        in_specs=[
            pl.BlockSpec((slab_rows, kc), lambda t: (t, 0)),
            pl.BlockSpec((kh_eff, kc, cp), lambda t: (0, 0, 0)),
        ],
        out_specs=(
            pl.BlockSpec((tile_m, cp), lambda t: (t, 0)),
            pl.BlockSpec((1, 2, cp), lambda t: (t, 0, 0)),
        ),
        scratch_shapes=[pltpu.VMEM((tile_m, cp), jnp.float32)],
        compiler_params=pltpu.CompilerParams(
            dimension_semantics=("parallel",),
            vmem_limit_bytes=vmem_limit),
        cost_estimate=p1_cost,
    )(x_slabs, w_k)

    # ---- finish BN statistics (tiny (2, Cp) math between the two kernels) --
    # TODO(synk): for very large N*OH*OW a Welford-style combine of the
    # per-tile partials would be more stable than E[x^2] - E[x]^2 in f32.
    stats = jnp.sum(stat_parts, axis=0)
    count = float(n * oh * ow)
    mean = stats[0] / count
    var = jnp.maximum(stats[1] / count - mean * mean, 0.0)   # biased, like torch
    inv_std = jax.lax.rsqrt(var + eps)
    gamma_p = jnp.pad(bn_gamma.astype(jnp.float32), (0, cp - cout))
    beta_p = jnp.pad(bn_beta.astype(jnp.float32), (0, cp - cout))
    scale = (gamma_p * inv_std).reshape(1, cp)
    shift = (beta_p - mean * gamma_p * inv_std).reshape(1, cp)

    # ---- phase 2: normalize + LeakyReLU over large streaming row blocks ----
    per_row = 2 * cp * (inter_b + out_b) + 64
    cap_rows = max(8, min(m_out, (budget // per_row) // 8 * 8))
    rows2 = cap_rows
    while rows2 > 8 and m_out % rows2:
        rows2 -= 8

    out_flat = pl.pallas_call(
        functools.partial(_bn_act_kernel, slope=slope),
        out_shape=jax.ShapeDtypeStruct((m_out, cp), out_dtype),
        grid=(m_out // rows2,),
        in_specs=[
            pl.BlockSpec((rows2, cp), lambda r: (r, 0)),
            pl.BlockSpec((1, cp), lambda r: (0, 0)),
            pl.BlockSpec((1, cp), lambda r: (0, 0)),
        ],
        out_specs=pl.BlockSpec((rows2, cp), lambda r: (r, 0)),
        compiler_params=pltpu.CompilerParams(
            dimension_semantics=("parallel",),
            vmem_limit_bytes=vmem_limit),
        cost_estimate=pl.CostEstimate(
            flops=int(3 * m_out * cp), transcendentals=0,
            bytes_accessed=int(m_out * cp * (inter_b + out_b))),
    )(conv_flat, scale, shift)

    # ---- drop garbage width columns / padded channels, back to NCHW --------
    # TODO(synk): keep NHWC across a network; this only matches PyTorch's API.
    out = out_flat.reshape(n, oh, wp8, cp)[:, :, :ow, :cout]
    return jnp.transpose(out, (0, 3, 1, 2))


# ---------------------------------------------------------------------------
# Pure-JAX reference (same bf16-operand / f32-accumulate conv as the kernel).
# ---------------------------------------------------------------------------
def reference_forward(x, conv_w, bn_gamma, bn_beta, *, stride=1, padding=1,
                      eps=1e-5, slope=0.1, compute_dtype=jnp.bfloat16):
    y = jax.lax.conv_general_dilated(
        x.astype(compute_dtype), conv_w.astype(compute_dtype),
        window_strides=(stride, stride),
        padding=((padding, padding), (padding, padding)),
        dimension_numbers=("NCHW", "OIHW", "NCHW"),
        preferred_element_type=jnp.float32)
    mean = jnp.mean(y, axis=(0, 2, 3), keepdims=True)
    var = jnp.mean((y - mean) ** 2, axis=(0, 2, 3), keepdims=True)
    yhat = (y - mean) * jax.lax.rsqrt(var + eps)
    yhat = bn_gamma.reshape(1, -1, 1, 1) * yhat + bn_beta.reshape(1, -1, 1, 1)
    return jnp.where(yhat > 0, yhat, slope * yhat)


if __name__ == "__main__":
    # CNNBlock(in_channels=4, out_channels=8, kernel_size=3, stride=1, padding=1)
    # applied to x of shape (2, 4, 16, 16).
    key = jax.random.PRNGKey(0)
    k_x, k_w, k_g, k_b = jax.random.split(key, 4)

    N, Cin, H, W = 2, 4, 16, 16
    Cout, KH, KW = 8, 3, 3

    x = jax.random.normal(k_x, (N, Cin, H, W), dtype=jnp.float32)
    conv_w = jax.random.normal(k_w, (Cout, Cin, KH, KW), dtype=jnp.float32) * 0.1
    bn_gamma = 1.0 + 0.1 * jax.random.normal(k_g, (Cout,), dtype=jnp.float32)
    bn_beta = 0.05 * jax.random.normal(k_b, (Cout,), dtype=jnp.float32)

    # tile_oh=8 -> 2 row-tiles per image, 4 grid steps: exercises the halo'd
    # slab gather, the auto-pipelined 'parallel' grid and the partial-stats
    # reduction across tiles.
    out = cnn_block_forward(x, conv_w, bn_gamma, bn_beta, stride=1, padding=1,
                            tile_oh=8)
    out = jax.block_until_ready(out)

    ref = reference_forward(x, conv_w, bn_gamma, bn_beta, stride=1, padding=1)
    assert out.shape == (N, Cout, H, W), out.shape
    max_err = float(jnp.max(jnp.abs(out - ref)))
    # bf16 inter-phase storage bounds the normalized-output error well inside
    # this tolerance (error slope ~0.004*|ref| vs rtol slope 0.01).
    assert jnp.allclose(out, ref, atol=5e-3, rtol=1e-2), max_err

    print("KERNEL_OK")
</pallas_src>

<mosaic_0001>
module attributes {stable_mosaic.version = 11 : i64} {
  func.func @_conv_stats_kernel(%arg0: i32, %arg1: memref<240x12xbf16, #tpu.memory_space<vmem>>, %arg2: memref<3x12x8xbf16, #tpu.memory_space<vmem>>, %arg3: memref<192x8xbf16, #tpu.memory_space<vmem>>, %arg4: memref<1x2x8xf32, #tpu.memory_space<vmem>>, %arg5: memref<192x8xf32, #tpu.memory_space<vmem>>) attributes {dimension_semantics = [#tpu.dimension_semantics<parallel>], iteration_bounds = array<i64: 4>, scalar_prefetch = 0 : i64, scratch_operands = 1 : i64, tpu.core_type = #tpu.core_type<tc>, window_params = [{transform_indices = @transform_0, window_bounds = array<i64: 240, 12>}, {pipeline_mode = #tpu.pipeline_mode<synchronous>, transform_indices = @transform_1, window_bounds = array<i64: 3, 12, 8>}, {transform_indices = @transform_2, window_bounds = array<i64: 192, 8>}, {transform_indices = @transform_3, window_bounds = array<i64: 1, 2, 8>}]} {
    %c0 = arith.constant 0 : index
    %c0_0 = arith.constant 0 : index
    %0 = vector.load %arg1[%c0, %c0_0] : memref<240x12xbf16, #tpu.memory_space<vmem>>, vector<192x12xbf16>
    %c0_1 = arith.constant 0 : index
    %c0_2 = arith.constant 0 : index
    %c0_3 = arith.constant 0 : index
    %1 = vector.load %arg2[%c0_1, %c0_2, %c0_3] : memref<3x12x8xbf16, #tpu.memory_space<vmem>>, vector<1x12x8xbf16>
    %2 = vector.shape_cast %1 : vector<1x12x8xbf16> to vector<12x8xbf16>
    %cst = arith.constant dense<0.000000e+00> : vector<192x8xf32>
    %3 = tpu.matmul %0, %2, %cst {dimension_numbers = #tpu.dot_dimension_numbers<[1], [0], [0], [1], [0, 0, 1, 1], [], []>} : vector<192x12xbf16>, vector<12x8xbf16>, vector<192x8xf32> -> vector<192x8xf32>
    %c0_4 = arith.constant 0 : index
    %c0_5 = arith.constant 0 : index
    %4 = vector.load %arg5[%c0_4, %c0_5] : memref<192x8xf32, #tpu.memory_space<vmem>>, vector<192x8xf32>
    tpu.vector_store %arg5[%c0_4, %c0_5], %3 {strides = array<i32>} : memref<192x8xf32, #tpu.memory_space<vmem>>, vector<192x8xf32>,
    %c24 = arith.constant 24 : index
    %c0_6 = arith.constant 0 : index
    %5 = vector.load %arg1[%c24, %c0_6] : memref<240x12xbf16, #tpu.memory_space<vmem>>, vector<192x12xbf16>
    %c0_7 = arith.constant 0 : index
    %c0_8 = arith.constant 0 : index
    %6 = vector.load %arg5[%c0_7, %c0_8] : memref<192x8xf32, #tpu.memory_space<vmem>>, vector<192x8xf32>
    %c1 = arith.constant 1 : index
    %c0_9 = arith.constant 0 : index
    %c0_10 = arith.constant 0 : index
    %7 = vector.load %arg2[%c1, %c0_9, %c0_10] : memref<3x12x8xbf16, #tpu.memory_space<vmem>>, vector<1x12x8xbf16>
    %8 = vector.shape_cast %7 : vector<1x12x8xbf16> to vector<12x8xbf16>
    %cst_11 = arith.constant dense<0.000000e+00> : vector<192x8xf32>
    %9 = tpu.matmul %5, %8, %cst_11 {dimension_numbers = #tpu.dot_dimension_numbers<[1], [0], [0], [1], [0, 0, 1, 1], [], []>} : vector<192x12xbf16>, vector<12x8xbf16>, vector<192x8xf32> -> vector<192x8xf32>
    %10 = arith.addf %6, %9 : vector<192x8xf32>
    %c0_12 = arith.constant 0 : index
    %c0_13 = arith.constant 0 : index
    %11 = vector.load %arg5[%c0_12, %c0_13] : memref<192x8xf32, #tpu.memory_space<vmem>>, vector<192x8xf32>
    tpu.vector_store %arg5[%c0_12, %c0_13], %10 {strides = array<i32>} : memref<192x8xf32, #tpu.memory_space<vmem>>, vector<192x8xf32>,
    %c48 = arith.constant 48 : index
    %c0_14 = arith.constant 0 : index
    %12 = vector.load %arg1[%c48, %c0_14] : memref<240x12xbf16, #tpu.memory_space<vmem>>, vector<192x12xbf16>
    %c0_15 = arith.constant 0 : index
    %c0_16 = arith.constant 0 : index
    %13 = vector.load %arg5[%c0_15, %c0_16] : memref<192x8xf32, #tpu.memory_space<vmem>>, vector<192x8xf32>
    %c2 = arith.constant 2 : index
    %c0_17 = arith.constant 0 : index
    %c0_18 = arith.constant 0 : index
    %14 = vector.load %arg2[%c2, %c0_17, %c0_18] : memref<3x12x8xbf16, #tpu.memory_space<vmem>>, vector<1x12x8xbf16>
    %15 = vector.shape_cast %14 : vector<1x12x8xbf16> to vector<12x8xbf16>
    %cst_19 = arith.constant dense<0.000000e+00> : vector<192x8xf32>
    %16 = tpu.matmul %12, %15, %cst_19 {dimension_numbers = #tpu.dot_dimension_numbers<[1], [0], [0], [1], [0, 0, 1, 1], [], []>} : vector<192x12xbf16>, vector<12x8xbf16>, vector<192x8xf32> -> vector<192x8xf32>
    %17 = arith.addf %13, %16 : vector<192x8xf32>
    %c0_20 = arith.constant 0 : index
    %c0_21 = arith.constant 0 : index
    %18 = vector.load %arg5[%c0_20, %c0_21] : memref<192x8xf32, #tpu.memory_space<vmem>>, vector<192x8xf32>
    tpu.vector_store %arg5[%c0_20, %c0_21], %17 {strides = array<i32>} : memref<192x8xf32, #tpu.memory_space<vmem>>, vector<192x8xf32>,
    %c0_22 = arith.constant 0 : index
    %c0_23 = arith.constant 0 : index
    %19 = vector.load %arg5[%c0_22, %c0_23] : memref<192x8xf32, #tpu.memory_space<vmem>>, vector<192x8xf32>
    %20 = arith.truncf %19 : vector<192x8xf32> to vector<192x8xbf16>
    %c0_24 = arith.constant 0 : index
    %c0_25 = arith.constant 0 : index
    %21 = vector.load %arg3[%c0_24, %c0_25] : memref<192x8xbf16, #tpu.memory_space<vmem>>, vector<192x8xbf16>
    tpu.vector_store %arg3[%c0_24, %c0_25], %20 {strides = array<i32>} : memref<192x8xbf16, #tpu.memory_space<vmem>>, vector<192x8xbf16>,
    %22 = tpu.iota {dimensions = array<i32: 1>} : vector<1x192xi32>
    %c24_i32 = arith.constant 24 : i32
    %c0_i32 = arith.constant 0 : i32
    %23 = arith.cmpi eq, %c24_i32, %c0_i32 : i32
    %c1_i32 = arith.constant 1 : i32
    %24 = arith.select %23, %c1_i32, %c24_i32 : i32
    %25 = vector.broadcast %24 : i32 to vector<1x192xi32>
    %26 = arith.remsi %22, %25 : vector<1x192xi32>
    %c0_i32_26 = arith.constant 0 : i32
    %27 = vector.broadcast %c0_i32_26 : i32 to vector<1x192xi32>
    %28 = arith.cmpi ne, %26, %27 : vector<1x192xi32>
    %c0_i32_27 = arith.constant 0 : i32
    %29 = vector.broadcast %c0_i32_27 : i32 to vector<1x192xi32>
    %30 = arith.cmpi slt, %26, %29 : vector<1x192xi32>
    %c0_i32_28 = arith.constant 0 : i32
    %31 = arith.cmpi slt, %24, %c0_i32_28 : i32
    %32 = vector.broadcast %31 : i1 to vector<1x192xi1>
    %33 = vector.broadcast %32 : vector<1x192xi1> to vector<1x192xi1>
    %34 = arith.xori %30, %33 : vector<1x192xi1>
    %35 = arith.andi %34, %28 : vector<1x192xi1>
    %36 = vector.broadcast %24 : i32 to vector<1x192xi32>
    %37 = arith.addi %26, %36 : vector<1x192xi32>
    %38 = arith.select %35, %37, %26 : vector<1x192xi1>, vector<1x192xi32>
    %c16_i32 = arith.constant 16 : i32
    %39 = vector.broadcast %c16_i32 : i32 to vector<1x192xi32>
    %40 = arith.cmpi slt, %38, %39 : vector<1x192xi32>
    %41 = arith.extui %40 : vector<1x192xi1> to vector<1x192xi32>
    %42 = arith.sitofp %41 : vector<1x192xi32> to vector<1x192xf32>
    %cst_29 = arith.constant dense<0.000000e+00> : vector<1x8xf32>
    %43 = tpu.matmul %42, %19, %cst_29 {dimension_numbers = #tpu.dot_dimension_numbers<[1], [0], [0], [1], [0, 0, 1, 1], [], []>} : vector<1x192xf32>, vector<192x8xf32>, vector<1x8xf32> -> vector<1x8xf32>
    %44 = arith.mulf %19, %19 : vector<192x8xf32>
    %cst_30 = arith.constant dense<0.000000e+00> : vector<1x8xf32>
    %45 = tpu.matmul %42, %44, %cst_30 {dimension_numbers = #tpu.dot_dimension_numbers<[1], [0], [0], [1], [0, 0, 1, 1], [], []>} : vector<1x192xf32>, vector<192x8xf32>, vector<1x8xf32> -> vector<1x8xf32>
    %46 = tpu.concatenate %43, %45 in 0 : vector<1x8xf32>, vector<1x8xf32> -> vector<2x8xf32>
    %c0_31 = arith.constant 0 : index
    %c0_32 = arith.constant 0 : index
    %c0_33 = arith.constant 0 : index
    %47 = vector.load %arg4[%c0_31, %c0_32, %c0_33] : memref<1x2x8xf32, #tpu.memory_space<vmem>>, vector<1x2x8xf32>
    %48 = vector.shape_cast %47 : vector<1x2x8xf32> to vector<2x8xf32>
    %49 = vector.shape_cast %46 : vector<2x8xf32> to vector<1x2x8xf32>
    tpu.vector_store %arg4[%c0_31, %c0_32, %c0_33], %49 {strides = array<i32>} : memref<1x2x8xf32, #tpu.memory_space<vmem>>, vector<1x2x8xf32>,
    return
  }
  func.func @transform_0(%arg0: i32) -> (i32, i32) {
    %c0_i32 = arith.constant 0 : i32
    %c0_i32_0 = arith.constant 0 : i32
    return %arg0, %c0_i32 : i32, i32
  }
  func.func @transform_1(%arg0: i32) -> (i32, i32, i32) {
    %c0_i32 = arith.constant 0 : i32
    %c0_i32_0 = arith.constant 0 : i32
    %c0_i32_1 = arith.constant 0 : i32
    %c0_i32_2 = arith.constant 0 : i32
    return %c0_i32, %c0_i32_0, %c0_i32_1 : i32, i32, i32
  }
  func.func @transform_2(%arg0: i32) -> (i32, i32) {
    %c0_i32 = arith.constant 0 : i32
    %c0_i32_0 = arith.constant 0 : i32
    return %arg0, %c0_i32 : i32, i32
  }
  func.func @transform_3(%arg0: i32) -> (i32, i32, i32) {
    %c0_i32 = arith.constant 0 : i32
    %c0_i32_0 = arith.constant 0 : i32
    %c0_i32_1 = arith.constant 0 : i32
    return %arg0, %c0_i32, %c0_i32_0 : i32, i32, i32
  }
}

</mosaic_0001>

<bundles_post_ra>
// kernel: tpu_custom_call.1
= control target key start
LH: loop header
LB: loop body
LE: loop exit
PB: predicated region body
PF: predicated region fallthrough
CT: control target
= control target key end

     0   :  { %9 = vsyncpa [#allocation4], 0  ;;  %s2519_s0 = inlined_call_operand.vmem [shape: bf16[960,12], index: 0, kind: input, shape index: {}]   ;;  %s2520_s1 = inlined_call_operand.vmem [shape: bf16[3,12,8], index: 1, kind: input, shape index: {}]   ;;  %s2521_s2 = inlined_call_operand.vmem [shape: bf16[768,8], index: 2, kind: output, shape index: {0}]   ;;  %s2522_s3 = inlined_call_operand.hbm [shape: f32[4,2,8], index: 3, kind: output, shape index: {1}]  }
   0x1   :  { %11 = vsyncpa [#allocation4 + $0x1], 0  ;;  %s2116_s12 = smov 0   ;;  %s2118_s13 = smov 0  }
   0x2   :  { %s2120_s14 = smov 0   ;;  %s2122_s15 = smov 0  }
   0x3 LB: > { %s2137_s16 = sadd.s32 4294967295, %s2090_s15   ;;  %s1604_s17 = sadd.s32 4294967294, %s2090_s15   ;;  %s2090_s15 = sphi %s2122_s15, %s2529_s15   ;;  %s2086_s14 = sphi %s2120_s14, %s2528_s14   ;;  %s2082_s13 = sphi %s2118_s13, %s2527_s13   ;;  %s2078_s12 = sphi %s2116_s12, %s2526_s12  }
   0x4   : > { %s2141_s18 = sadd.s32 1, %s2090_s15   ;;  %s97_s19 = sadd.s32 1, %s2086_s14 }
   0x5   : > { %s94_s20 = ssub.s32 %s2090_s15, %s2141_s18  ;;  %p107_p0 = scmp.ne.s32.totalorder %s2086_s14, %s2082_s13 }
   0x6   : > { %p95_p1 = scmp.eq.s32.totalorder %s94_s20, 0  ;;  %p108_p2 = scmp.eq.s32.totalorder %s2137_s16, 3 }
   0x7   : > { %p113_p3 = scmp.ne.s32.totalorder %s2082_s13, %s2078_s12  ;;  %p114_p4 = scmp.eq.s32.totalorder %s1604_s17, 3 }
   0x8   : > { %s2152_s21 = scalar_select %p95_p1, %s2086_s14, %s97_s19  }
   0x9   : > { %p2154_p5 = por %p108_p2, %p107_p0  ;;  %p2158_p6 = por %p114_p4, %p113_p3 }
   0xa   : > { %p1607_p7 = scmp.ge.s32.totalorder %s2090_s15, 1  ;;  %p144_p8 = scmp.lt.s32.totalorder %s2090_s15, 5 }
   0xc   : > { %p145_p9 = pnand %p1607_p7, %p144_p8 }
   0xd   : > { %v1989_v0 = vld [vmem:[%s2520_s1] sm:$0x3f] (!%p145_p9)   ;;  %vm314_vm0 = vcmask (!%p145_p9), 1045504   ;;  %s173_s26 = smul.u32 (!%p145_p9), 30, %s2137_s16  ;;  %v1992_v2 = vld [vmem:[%s2520_s1 + $0x8] sm:$0x3f] (!%p145_p9)   ;;  %v1281_v43 = vlaneseq (!%p145_p9) }
   0xe   : > { %148 = sbr.rel (%p145_p9) target bundleno = 566 (0x236), region = 28  ;;  %1940 = vmatprep.subr.msk.bf16.mxu1 (!%p145_p9), %vm314_vm0, %v1989_v0  ;;  %v316_v1 = vsel (!%p145_p9), %vm314_vm0, %v1989_v0, 0  ;;  %1939 = vmatprep.subr.msk.bf16.mxu0 (!%p145_p9), %vm314_vm0, %v1989_v0  ;;  %v1997_v3 = vld [vmem:[%s2520_s1 + $0x10] sm:$0x3f] (!%p145_p9)   ;;  %vm277_vm1 = vcmask (!%p145_p9), 97280   ;;  %v625_v6 = vsel (!%p145_p9), %vm314_vm0, %v1992_v2, 0 }
   0xf   : > { %1938 = vmatpush3.bf16.msra.mxu1 (!%p145_p9), %v316_v1  ;;  %p174_p10 = scmp.lt.s32.totalorder (!%p145_p9), %s173_s26, 119  ;;  %1788 = vmatpush3.bf16.msra.mxu0 (!%p145_p9), %v316_v1  ;;  %v957_v9 = vsel (!%p145_p9), %vm314_vm0, %v1997_v3, 0  ;;  %v2092_v42 = vmov (!%p145_p9), 0.0|0.0   ;;  %v2260_v44 = vand.u32 (!%p145_p9), 127, %v1281_v43  ;;  %vm1322_vm6 = vcmask (!%p145_p9), 523264   ;;  %s179_s8 = smul.u32 (!%p145_p9), 24, %s2137_s16 }
  0x10   : > { %1941 = vmatprep.subr.msk.bf16.mxu1 (!%p145_p9), %vm314_vm0, %v1992_v2  ;;  %1942 = vmatprep.subr.msk.bf16.mxu0 (!%p145_p9), %vm314_vm0, %v1997_v3  ;;  %v2093_v53 = vmov (!%p145_p9), 0.0   ;;  %vm447_vm7 = vcmask (!%p145_p9), 64512   ;;  %vm1256_vm8 = vcmask (!%p145_p9), 60416   ;;  %s170_s20 = sand.u32 (!%p145_p9), 1, %s2082_s13   ;;  %s1721_s25 = sshll.u32 (!%p145_p9), %s2137_s16, 5  ;;  %vm1493_vm13 = vcmask (!%p145_p9), 1040384  }
  0x11   : > { %v1283_v45 = vadd.s32 (!%p145_p9), 128, %v2260_v44  ;;  %p2298_p11 = scmp.lt.s32.totalorder (!%p145_p9), %s179_s8, 95  ;;  %s1608_s24 = sshll.u32 (!%p145_p9), %s170_s20, 1  ;;  %vm1495_vm14 = vcmask (!%p145_p9), 58368  }
  0x12   : > { %s2477_s30 = scalar_lea.hbm (!%p145_p9), %s2522_s3, %s1721_s25  ;;  %s1503_s16 = scalar_lea.sflag (!%p145_p9), [#allocation4], %s170_s20 }
  0x13   : > { %v2263_v46 = vmul.u32.u64.low (!%p145_p9), 2863311531, %v1283_v45  ;;  %v2264_v47 = vmul.u32.u64.high 2863311531, %v1283_v45, %v2263_v46  ;;  %s2095_s5 = smov (!%p145_p9), [#allocation3]  }
  0x14   : > { %s2032_s6 = sshll.u32 (!%p145_p9), %s2095_s5, 4  ;;  %s2033_s6 = int_to_ptr.vmem [resolvable:$false] %s2032_s6 }
  0x15   : > { %s2531_s26 = smov (!%p174_p10, %s173_s26), 119  ;;  %v1301_v48 = vshrl.u32 %v2264_v47, 4  ;;  %s2533_s8 = smov (!%p2298_p11, %s179_s8), 95 }
  0x16   : > { %s1609_s4 = sshll.u32 %s2531_s26, 2  ;;  %s1610_s10 = sshll.u32 %s2533_s8, 2 }
  0x17   : > { %s2182_s7 = scalar_lea.vmem %s2519_s0, %s1609_s4  ;;  %v1302_v49 = vmul.u32 24, %v1301_v48  ;;  %s2322_s19 = scalar_lea.vmem %s2521_s2, %s1610_s10 }
  0x18   : > { %v1990_v4 = vld [vmem:[%s2182_s7 + $0x30] sm:$0xff]   ;;  %v1991_v5 = vld [vmem:[%s2182_s7 + $0x38] sm:$0xff]   ;;  %v1993_v7 = vld [vmem:[%s2182_s7] sm:$0xff]   ;;  %s172_s26 = scalar_lea.vmem [#allocation3], %s1608_s24 }
  0x19   : > { %1801 = vmatprep.mubr.msk.bf16.mxu1 %vm277_vm1, %v1990_v4  ;;  %v1994_v8 = vld [vmem:[%s2182_s7 + $0x8] sm:$0xff]   ;;  %1789 = vmatprep.mubr.msk.bf16.mxu0 %vm277_vm1, %v1993_v7  ;;  %v1995_v10 = vld [vmem:[%s2182_s7 + $0x40] sm:$0xff]   ;;  %v1998_v11 = vld [vmem:[%s2182_s7 + $0x10] sm:$0xff]   ;;  %v1303_v50 = vsub.s32 %v1283_v45, %v1302_v49  ;;  %s1520_s27 = sshll.u32 %s172_s26, 4  ;;  %s2479_s27 = int_to_ptr.vmem [resolvable:$true] %s1520_s27 }
  0x1a   : > { %1802 = vmatmul.mubr.msk.bf16.vlgmr.msra.gmra.mrb[0].mxu1 %vm277_vm1, %v1991_v5  ;;  %1790 = vmatmul.mubr.msk.bf16.vlgmr.msra.gmra.mrb[0].mxu0 %vm277_vm1, %v1994_v8  ;;  %v1996_v12 = vld [vmem:[%s2182_s7 + $0x48] sm:$0xff]   ;;  %v2000_v13 = vld [vmem:[%s2182_s7 + $0x50] sm:$0xff]   ;;  %v1999_v14 = vld [vmem:[%s2182_s7 + $0x18] sm:$0xff]   ;;  %s2028_s4 = scalar_lea.vmem %s2479_s27, 32  ;;  %p2035_p1 = scmp.lt.s32.totalorder %s2479_s27, %s2033_s6 }
  0x1b   : > { %1814 = vmatpush3.bf16.msra.mxu1 %v625_v6  ;;  %1805 = vmatprep.mubr.msk.bf16.mxu1 %vm277_vm1, %v1995_v10  ;;  %v2002_v15 = vld [vmem:[%s2182_s7 + $0x20] sm:$0xff]   ;;  %v2001_v16 = vld [vmem:[%s2182_s7 + $0x58] sm:$0xff]   ;;  %v2004_v17 = vld [vmem:[%s2182_s7 + $0xc] sm:$0xff]   ;;  %vm1307_vm2 = vcmp.ne.s32.totalorder %v1303_v50, 0  ;;  %vm1309_vm3 = vcmp.lt.s32.totalorder %v1303_v50, 0  ;;  %v1313_v51 = vadd.s32 24, %v1303_v50  ;;  %p2029_p12 = scmp.ne.s32.totalorder %s2479_s27, %s2028_s4 }
  0x1c   : > { %1840 = vmatpush3.bf16.msra.mxu0 %v957_v9  ;;  %1793 = vmatprep.mubr.msk.bf16.mxu0 %vm277_vm1, %v1998_v11  ;;  %v2003_v18 = vld [vmem:[%s2182_s7 + $0x28] sm:$0xff]   ;;  %v2006_v19 = vld [vmem:[%s2182_s7 + $0x18] sm:$0xff]   ;;  %v2008_v22 = vld [vmem:[%s2182_s7 + $0x20] sm:$0xff]  }
  0x1d   : > { %v2005_v20 = vld [vmem:[%s2182_s7 + $0x14] sm:$0xff]   ;;  %v2007_v21 = vld [vmem:[%s2182_s7 + $0x1c] sm:$0xff]   ;;  %v2010_v23 = vld [vmem:[%s2182_s7 + $0x28] sm:$0xff]   ;;  %1865 = vmatprep.subr.bf16.mxu1 %v2092_v42  ;;  %1901 = vmatprep.subr.bf16.mxu0 %v2092_v42  ;;  %p2030_p13 = pnand %p2029_p12, %p2154_p5 }
  0x1e   : > { %v2009_v24 = vld [vmem:[%s2182_s7 + $0x24] sm:$0xff]   ;;  %v2011_v25 = vld [vmem:[%s2182_s7 + $0x2c] sm:$0xff]   ;;  %v2014_v27 = vld [vmem:[%s2182_s7 + $0x38] sm:$0xff]  }
  0x1f   : > { %v2012_v26 = vld [vmem:[%s2182_s7 + $0x30] sm:$0xff]   ;;  %v2015_v29 = vld [vmem:[%s2182_s7 + $0x3c] sm:$0xff]   ;;  %v2018_v31 = vld [vmem:[%s2182_s7 + $0x48] sm:$0xff]   ;;  %p2031_p0 = pneg %p2030_p13 }
  0x20   : > { %v2013_v28 = vld [vmem:[%s2182_s7 + $0x34] sm:$0xff]   ;;  %v2016_v30 = vld [vmem:[%s2182_s7 + $0x40] sm:$0xff]   ;;  %v2019_v33 = vld [vmem:[%s2182_s7 + $0x4c] sm:$0xff]  }
  0x21   : > { %v2017_v32 = vld [vmem:[%s2182_s7 + $0x44] sm:$0xff]   ;;  %v2020_v34 = vld [vmem:[%s2182_s7 + $0x50] sm:$0xff]   ;;  %v2022_v35 = vld [vmem:[%s2182_s7 + $0x58] sm:$0xff]  }
  0x22   : > { %1806 = vmatmul.mubr.msk.bf16.gmra.mrb[4].mxu1 %vm277_vm1, %v1996_v12  ;;  %1794 = vmatmul.mubr.msk.bf16.gmra.mrb[4].mxu0 %vm277_vm1, %v1999_v14  ;;  %v2021_v36 = vld [vmem:[%s2182_s7 + $0x54] sm:$0xff]   ;;  %v2023_v37 = vld [vmem:[%s2182_s7 + $0x5c] sm:$0xff]   ;;  %v2026_v39 = vld [vmem:[%s2182_s7 + $0x68] sm:$0xff]  }
  0x23   : > { %1809 = vmatprep.mubr.msk.bf16.mxu1 %vm277_vm1, %v2000_v13  ;;  %1797 = vmatprep.mubr.msk.bf16.mxu0 %vm277_vm1, %v2002_v15  ;;  %v2024_v38 = vld [vmem:[%s2182_s7 + $0x60] sm:$0xff]   ;;  %v2027_v41 = vld [vmem:[%s2182_s7 + $0x70] sm:$0xff]   ;;  %vm1311_vm4 = vmand %vm1309_vm3, %vm1307_vm2 }
  0x24   : > { %v2025_v40 = vld [vmem:[%s2182_s7 + $0x64] sm:$0xff]   ;;  %v1315_v52 = vsel %vm1311_vm4, %v1313_v51, %v1303_v50  ;;  %s2034_s7 = scalar_lea.vmem %s2033_s6, 64 }
  0x25   : > { %vm1317_vm5 = vcmp.lt.s32.totalorder %v1315_v52, 16  ;;  %p2036_p2 = scmp.lt.s32.totalorder %s2034_s7, %s2028_s4 }
  0x26   : > { %v1715_v54 = vsel %vm1317_vm5, 1.0, %v2093_v53 }
  0x27   : > { %p2037_p3 = por %p2036_p2, %p2035_p1 }
  0x29   : > { %p2038_p4 = pnand %p2037_p3, %p2031_p0 }
  0x2a   : > { %1810 = vmatmul.mubr.msk.bf16.gmra.mrb[8].mxu1 %vm277_vm1, %v2001_v16  ;;  %1798 = vmatmul.mubr.msk.bf16.gmra.mrb[8].mxu0 %vm277_vm1, %v2003_v18 }
  0x2b   : > { %1815 = vmatprep.mubr.msk.bf16.mxu1 %vm277_vm1, %v2004_v17  ;;  %1841 = vmatprep.mubr.msk.bf16.mxu0 %vm277_vm1, %v2006_v19 }
  0x32   : > { %1816 = vmatmul.mubr.msk.bf16.vlgmr.msra.gmra.mrb[12].mxu1 %vm277_vm1, %v2005_v20  ;;  %1842 = vmatmul.mubr.msk.bf16.vlgmr.msra.gmra.mrb[12].mxu0 %vm277_vm1, %v2008_v22 }
  0x33   : > { %1819 = vmatprep.mubr.msk.bf16.mxu1 %vm277_vm1, %v2007_v21  ;;  %1845 = vmatprep.mubr.msk.bf16.mxu0 %vm277_vm1, %v2010_v23 }
  0x3a   : > { %1820 = vmatmul.mubr.msk.bf16.gmra.mrb[16].mxu1 %vm277_vm1, %v2009_v24  ;;  %1846 = vmatmul.mubr.msk.bf16.gmra.mrb[16].mxu0 %vm277_vm1, %v2012_v26 }
  0x3b   : > { %1823 = vmatprep.mubr.msk.bf16.mxu1 %vm277_vm1, %v2011_v25  ;;  %1849 = vmatprep.mubr.msk.bf16.mxu0 %vm277_vm1, %v2014_v27 }
  0x42   : > { %1824 = vmatmul.mubr.msk.bf16.gmra.mrb[20].mxu1 %vm277_vm1, %v2013_v28  ;;  %1850 = vmatmul.mubr.msk.bf16.gmra.mrb[20].mxu0 %vm277_vm1, %v2016_v30 }
  0x43   : > { %1827 = vmatprep.mubr.msk.bf16.mxu1 %vm277_vm1, %v2015_v29  ;;  %1853 = vmatprep.mubr.msk.bf16.mxu0 %vm277_vm1, %v2018_v31 }
  0x4a   : > { %1828 = vmatmul.mubr.msk.bf16.gmra.mrb[24].mxu1 %vm277_vm1, %v2017_v32  ;;  %1854 = vmatmul.mubr.msk.bf16.gmra.mrb[24].mxu0 %vm277_vm1, %v2020_v34 }
  0x4b   : > { %1831 = vmatprep.mubr.msk.bf16.mxu1 %vm277_vm1, %v2019_v33  ;;  %1857 = vmatprep.mubr.msk.bf16.mxu0 %vm277_vm1, %v2022_v35 }
  0x52   : > { %1832 = vmatmul.mubr.msk.bf16.gmra.mrb[28].mxu1 %vm277_vm1, %v2021_v36  ;;  %1858 = vmatmul.mubr.msk.bf16.gmra.mrb[28].mxu0 %vm277_vm1, %v2024_v38 }
  0x53   : > { %1835 = vmatprep.mubr.msk.bf16.mxu1 %vm277_vm1, %v2023_v37  ;;  %1861 = vmatprep.mubr.msk.bf16.mxu0 %vm277_vm1, %v2026_v39 }
  0x5a   : > { %1836 = vmatmul.mubr.msk.bf16.gmra.mrb[32].mxu1 %vm277_vm1, %v2025_v40  ;;  %1862 = vmatmul.mubr.msk.bf16.gmra.mrb[32].mxu0 %vm277_vm1, %v2027_v41 }
  0x5b   : > { %1718 = vmatprep.mubr.msk.f32.mxu0 %vm1322_vm6, %v1715_v54  ;;  %1716 = vmatprep.mubr.msk.f32.mxu1 %vm1322_vm6, %v1715_v54 }
  0xed   : > { %v1803_v55 = vpop.f32.mrb[0].mxu1  ;;  %v1791_v58 = vpop.f32.mrb[0].mxu0 }
  0xee   : > { %462 = vst.msk [vmem:[#allocation2 + $0x70] sm:$0xff] %vm447_vm7, %v1803_v55  ;;  %v400_v56 = vpop.f32.mrb[1].mxu1  ;;  %450 = vst.msk [vmem:[#allocation2 + $0x10] sm:$0xff] %vm447_vm7, %v1791_v58  ;;  %v352_v60 = vpop.f32.mrb[1].mxu0 }
  0xef   : > { %460 = vst.msk [vmem:[#allocation2 + $0x60] sm:$0xff] %vm447_vm7, %v400_v56  ;;  %v1804_v57 = vpop.f32.mrb[2].mxu1  ;;  %448 = vst.msk [vmem:[#allocation2] sm:$0xff] %vm447_vm7, %v352_v60  ;;  %v1792_v61 = vpop.f32.mrb[2].mxu0 }
  0xf0   : > { %463 = vst.msk [vmem:[#allocation2 + $0x78] sm:$0xff] %vm447_vm7, %v1804_v57  ;;  %v403_v59 = vpop.f32.mrb[3].mxu1  ;;  %451 = vst.msk [vmem:[#allocation2 + $0x18] sm:$0xff] %vm447_vm7, %v1792_v61  ;;  %v355_v62 = vpop.f32.mrb[3].mxu0 }
  0xf1   : > { %461 = vst.msk [vmem:[#allocation2 + $0x68] sm:$0xff] %vm447_vm7, %v403_v59  ;;  %449 = vst.msk [vmem:[#allocation2 + $0x8] sm:$0xff] %vm447_vm7, %v355_v62 }
  0xf5   : > { %v1807_v63 = vpop.f32.mrb[4].mxu1  ;;  %v1795_v2 = vpop.f32.mrb[4].mxu0  ;;  %v498_v15 = vld [vmem:[#allocation2 + $0x10] sm:$0xff] }
  0xf6   : > { %466 = vst.msk [vmem:[#allocation2 + $0x90] sm:$0xff] %vm447_vm7, %v1807_v63  ;;  %v416_v0 = vpop.f32.mrb[5].mxu1  ;;  %454 = vst.msk [vmem:[#allocation2 + $0x30] sm:$0xff] %vm447_vm7, %v1795_v2  ;;  %v368_v4 = vpop.f32.mrb[5].mxu0  ;;  %v496_v18 = vld [vmem:[#allocation2] sm:$0xff] }
  0xf7   : > { %464 = vst.msk [vmem:[#allocation2 + $0x80] sm:$0xff] %vm447_vm7, %v416_v0  ;;  %v1808_v1 = vpop.f32.mrb[6].mxu1  ;;  %452 = vst.msk [vmem:[#allocation2 + $0x20] sm:$0xff] %vm447_vm7, %v368_v4  ;;  %v1796_v5 = vpop.f32.mrb[6].mxu0  ;;  %v499_v21 = vld [vmem:[#allocation2 + $0x18] sm:$0xff] }
  0xf8   : > { %467 = vst.msk [vmem:[#allocation2 + $0x98] sm:$0xff] %vm447_vm7, %v1808_v1  ;;  %v419_v3 = vpop.f32.mrb[7].mxu1  ;;  %455 = vst.msk [vmem:[#allocation2 + $0x38] sm:$0xff] %vm447_vm7, %v1796_v5  ;;  %v371_v6 = vpop.f32.mrb[7].mxu0  ;;  %v497_v25 = vld [vmem:[#allocation2 + $0x8] sm:$0xff] }
  0xf9   : > { %465 = vst.msk [vmem:[#allocation2 + $0x88] sm:$0xff] %vm447_vm7, %v419_v3  ;;  %453 = vst.msk [vmem:[#allocation2 + $0x28] sm:$0xff] %vm447_vm7, %v371_v6 }
  0xfd   : > { %v1811_v7 = vpop.f32.mrb[8].mxu1  ;;  %v1799_v10 = vpop.f32.mrb[8].mxu0  ;;  %v502_v31 = vld [vmem:[#allocation2 + $0x30] sm:$0xff] }
  0xfe   : > { %470 = vst.msk [vmem:[#allocation2 + $0xb0] sm:$0xff] %vm447_vm7, %v1811_v7  ;;  %v432_v8 = vpop.f32.mrb[9].mxu1  ;;  %458 = vst.msk [vmem:[#allocation2 + $0x50] sm:$0xff] %vm447_vm7, %v1799_v10  ;;  %v384_v12 = vpop.f32.mrb[9].mxu0  ;;  %v500_v34 = vld [vmem:[#allocation2 + $0x20] sm:$0xff] }
  0xff   : > { %468 = vst.msk [vmem:[#allocation2 + $0xa0] sm:$0xff] %vm447_vm7, %v432_v8  ;;  %v1812_v9 = vpop.f32.mrb[10].mxu1  ;;  %456 = vst.msk [vmem:[#allocation2 + $0x40] sm:$0xff] %vm447_vm7, %v384_v12  ;;  %v1800_v13 = vpop.f32.mrb[10].mxu0  ;;  %v503_v38 = vld [vmem:[#allocation2 + $0x38] sm:$0xff] }
 0x100   : > { %471 = vst.msk [vmem:[#allocation2 + $0xb8] sm:$0xff] %vm447_vm7, %v1812_v9  ;;  %v435_v11 = vpop.f32.mrb[11].mxu1  ;;  %459 = vst.msk [vmem:[#allocation2 + $0x58] sm:$0xff] %vm447_vm7, %v1800_v13  ;;  %v387_v14 = vpop.f32.mrb[11].mxu0  ;;  %v501_v46 = vld [vmem:[#allocation2 + $0x28] sm:$0xff] }
 0x101   : > { %469 = vst.msk [vmem:[#allocation2 + $0xa8] sm:$0xff] %vm447_vm7, %v435_v11  ;;  %457 = vst.msk [vmem:[#allocation2 + $0x48] sm:$0xff] %vm447_vm7, %v387_v14 }
 0x105   : > { %v1817_v16 = vpop.f32.mrb[12].mxu1  ;;  %v1843_v23 = vpop.f32.mrb[12].mxu0  ;;  %v506_v57 = vld [vmem:[#allocation2 + $0x50] sm:$0xff] }
 0x106   : > { %v758_v17 = vadd.f32 %v1817_v16, %v498_v15  ;;  %v661_v19 = vpop.f32.mrb[13].mxu1  ;;  %v993_v27 = vpop.f32.mrb[13].mxu0  ;;  %v504_v60 = vld [vmem:[#allocation2 + $0x40] sm:$0xff] }
 0x107   : > { %v756_v20 = vadd.f32 %v661_v19, %v496_v18  ;;  %v1818_v22 = vpop.f32.mrb[14].mxu1  ;;  %v1844_v29 = vpop.f32.mrb[14].mxu0  ;;  %v507_v0 = vld [vmem:[#allocation2 + $0x58] sm:$0xff] }
 0x108   : > { %782 = vst.msk [vmem:[#allocation2 + $0x10] sm:$0xff] %vm447_vm7, %v758_v17  ;;  %v759_v24 = vadd.f32 %v1818_v22, %v499_v21  ;;  %v664_v26 = vpop.f32.mrb[15].mxu1  ;;  %v996_v30 = vpop.f32.mrb[15].mxu0  ;;  %v505_v6 = vld [vmem:[#allocation2 + $0x48] sm:$0xff] }
 0x109   : > { %780 = vst.msk [vmem:[#allocation2] sm:$0xff] %vm447_vm7, %v756_v20  ;;  %v757_v28 = vadd.f32 %v664_v26, %v497_v25 }
 0x10a   : > { %783 = vst.msk [vmem:[#allocation2 + $0x18] sm:$0xff] %vm447_vm7, %v759_v24  ;;  %v510_v24 = vld [vmem:[#allocation2 + $0x70] sm:$0xff] }
 0x10b   : > { %781 = vst.msk [vmem:[#allocation2 + $0x8] sm:$0xff] %vm447_vm7, %v757_v28 }
 0x10d   : > { %v1821_v32 = vpop.f32.mrb[16].mxu1  ;;  %v1847_v40 = vpop.f32.mrb[16].mxu0 }
 0x10e   : > { %v762_v33 = vadd.f32 %v1821_v32, %v502_v31  ;;  %v677_v35 = vpop.f32.mrb[17].mxu1  ;;  %v1009_v48 = vpop.f32.mrb[17].mxu0  ;;  %v508_v31 = vld [vmem:[#allocation2 + $0x60] sm:$0xff] }
 0x10f   : > { %v830_v36 = vld [vmem:[#allocation2 + $0x10] sm:$0xff]  ;;  %v760_v37 = vadd.f32 %v677_v35, %v500_v34  ;;  %v1822_v39 = vpop.f32.mrb[18].mxu1  ;;  %v1848_v52 = vpop.f32.mrb[18].mxu0  ;;  %v511_v35 = vld [vmem:[#allocation2 + $0x78] sm:$0xff] }
 0x110   : > { %v1090_v41 = vadd.f32 %v1843_v23, %v830_v36  ;;  %786 = vst.msk [vmem:[#allocation2 + $0x30] sm:$0xff] %vm447_vm7, %v762_v33  ;;  %v828_v43 = vld [vmem:[#allocation2] sm:$0xff]  ;;  %v763_v45 = vadd.f32 %v1822_v39, %v503_v38  ;;  %v680_v47 = vpop.f32.mrb[19].mxu1  ;;  %v1012_v55 = vpop.f32.mrb[19].mxu0 }
 0x111   : > { %v1088_v49 = vadd.f32 %v993_v27, %v828_v43  ;;  %784 = vst.msk [vmem:[#allocation2 + $0x20] sm:$0xff] %vm447_vm7, %v760_v37  ;;  %v831_v50 = vld [vmem:[#allocation2 + $0x18] sm:$0xff]  ;;  %v761_v51 = vadd.f32 %v680_v47, %v501_v46 }
 0x112   : > { %1114 = vst.msk [vmem:[#allocation2 + $0x10] sm:$0xff] %vm447_vm7, %v1090_v41  ;;  %v1091_v53 = vadd.f32 %v1844_v29, %v831_v50  ;;  %787 = vst.msk [vmem:[#allocation2 + $0x38] sm:$0xff] %vm447_vm7, %v763_v45  ;;  %v829_v54 = vld [vmem:[#allocation2 + $0x8] sm:$0xff] }
 0x113   : > { %1112 = vst.msk [vmem:[#allocation2] sm:$0xff] %vm447_vm7, %v1088_v49  ;;  %v1089_v56 = vadd.f32 %v996_v30, %v829_v54  ;;  %785 = vst.msk [vmem:[#allocation2 + $0x28] sm:$0xff] %vm447_vm7, %v761_v51  ;;  %v509_v45 = vld [vmem:[#allocation2 + $0x68] sm:$0xff] }
 0x114   : > { %1115 = vst.msk [vmem:[#allocation2 + $0x18] sm:$0xff] %vm447_vm7, %v1091_v53 }
 0x115   : > { %1113 = vst.msk [vmem:[#allocation2 + $0x8] sm:$0xff] %vm447_vm7, %v1089_v56  ;;  %v1825_v58 = vpop.f32.mrb[20].mxu1  ;;  %v1851_v2 = vpop.f32.mrb[20].mxu0 }
 0x116   : > { %v766_v59 = vadd.f32 %v1825_v58, %v506_v57  ;;  %v693_v61 = vpop.f32.mrb[21].mxu1  ;;  %v1025_v8 = vpop.f32.mrb[21].mxu0 }
 0x117   : > { %v834_v62 = vld [vmem:[#allocation2 + $0x30] sm:$0xff]  ;;  %v764_v63 = vadd.f32 %v693_v61, %v504_v60  ;;  %v1826_v1 = vpop.f32.mrb[22].mxu1  ;;  %v1852_v12 = vpop.f32.mrb[22].mxu0 }
 0x118   : > { %v1094_v3 = vadd.f32 %v1847_v40, %v834_v62  ;;  %790 = vst.msk [vmem:[#allocation2 + $0x50] sm:$0xff] %vm447_vm7, %v766_v59  ;;  %v832_v4 = vld [vmem:[#allocation2 + $0x20] sm:$0xff]  ;;  %v767_v5 = vadd.f32 %v1826_v1, %v507_v0  ;;  %v696_v7 = vpop.f32.mrb[23].mxu1  ;;  %v1028_v16 = vpop.f32.mrb[23].mxu0 }
 0x119   : > { %v1092_v9 = vadd.f32 %v1009_v48, %v832_v4  ;;  %788 = vst.msk [vmem:[#allocation2 + $0x40] sm:$0xff] %vm447_vm7, %v764_v63  ;;  %v835_v10 = vld [vmem:[#allocation2 + $0x38] sm:$0xff]  ;;  %v765_v11 = vadd.f32 %v696_v7, %v505_v6  ;;  %v2324_v13 = vld [vmem:[#allocation2 + $0x10] sm:$0xff] }
 0x11a   : > { %1118 = vst.msk [vmem:[#allocation2 + $0x30] sm:$0xff] %vm447_vm7, %v1094_v3  ;;  %v1095_v14 = vadd.f32 %v1848_v52, %v835_v10  ;;  %791 = vst.msk [vmem:[#allocation2 + $0x58] sm:$0xff] %vm447_vm7, %v767_v5  ;;  %v833_v15 = vld [vmem:[#allocation2 + $0x28] sm:$0xff]  ;;  %v1136_v17 = vld [vmem:[#allocation2] sm:$0xff]  ;;  %v1726_v18 = vpack.c.bf16 %v2324_v13, %v2324_v13  ;;  %v1398_v52 = vmul.f32 %v2324_v13, %v2324_v13 }
 0x11b   : > { %1116 = vst.msk [vmem:[#allocation2 + $0x20] sm:$0xff] %vm447_vm7, %v1092_v9  ;;  %v1093_v19 = vadd.f32 %v1012_v55, %v833_v15  ;;  %789 = vst.msk [vmem:[#allocation2 + $0x48] sm:$0xff] %vm447_vm7, %v765_v11  ;;  %v1724_v20 = vpack.c.bf16 %v1136_v17, %v1136_v17  ;;  %v1139_v21 = vld [vmem:[#allocation2 + $0x18] sm:$0xff]  ;;  %v1396_v28 = vmul.f32 %v1136_v17, %v1136_v17  ;;  %v512_v9 = vld [vmem:[#allocation2 + $0x80] sm:$0xff] }
 0x11c   : > { %1119 = vst.msk [vmem:[#allocation2 + $0x38] sm:$0xff] %vm447_vm7, %v1095_v14  ;;  %v1137_v22 = vld [vmem:[#allocation2 + $0x8] sm:$0xff]  ;;  %v1727_v23 = vpack.c.bf16 %v1139_v21, %v1139_v21  ;;  %v1399_v39 = vmul.f32 %v1139_v21, %v1139_v21  ;;  %v1869_v51 = vpack.c.bf16 %v1139_v21, %v2324_v13  ;;  %v515_v13 = vld [vmem:[#allocation2 + $0x98] sm:$0xff] }
 0x11d   : > { %1259 = vst.msk [vmem:[%s2322_s19 + $0x8] sm:$0xf] %vm1256_vm8, %v1726_v18  ;;  %v1829_v25 = vpop.f32.mrb[24].mxu1  ;;  %v1725_v26 = vpack.c.bf16 %v1137_v22, %v1137_v22  ;;  %1257 = vst.msk [vmem:[%s2322_s19] sm:$0xf] %vm1256_vm8, %v1724_v20  ;;  %v1866_v27 = vpack.c.bf16 %v1137_v22, %v1136_v17  ;;  %v1397_v29 = vmul.f32 %v1137_v22, %v1137_v22  ;;  %v1855_v38 = vpop.f32.mrb[24].mxu0 }
 0x11e   : > { %1117 = vst.msk [vmem:[#allocation2 + $0x28] sm:$0xff] %vm447_vm7, %v1093_v19  ;;  %v770_v30 = vadd.f32 %v1829_v25, %v510_v24  ;;  %v709_v32 = vpop.f32.mrb[25].mxu1  ;;  %v1041_v47 = vpop.f32.mrb[25].mxu0  ;;  %v1905_v61 = vpack.c.bf16 %v1399_v39, %v1398_v52  ;;  %v513_v21 = vld [vmem:[#allocation2 + $0x88] sm:$0xff] }
 0x11f   : > { %1260 = vst.msk [vmem:[%s2322_s19 + $0xc] sm:$0xf] %vm1256_vm8, %v1727_v23  ;;  %v838_v33 = vld [vmem:[#allocation2 + $0x50] sm:$0xff]  ;;  %v768_v34 = vadd.f32 %v709_v32, %v508_v31  ;;  %v1830_v36 = vpop.f32.mrb[26].mxu1  ;;  %1258 = vst.msk [vmem:[%s2322_s19 + $0x4] sm:$0xf] %vm1256_vm8, %v1725_v26  ;;  %1867 = vmatpush1.bf16.msra.mxu1 %v1866_v27  ;;  %v1902_v37 = vpack.c.bf16 %v1397_v29, %v1396_v28 }
 0x120   : > { %v1098_v40 = vadd.f32 %v1851_v2, %v838_v33  ;;  %794 = vst.msk [vmem:[#allocation2 + $0x70] sm:$0xff] %vm447_vm7, %v770_v30  ;;  %v836_v41 = vld [vmem:[#allocation2 + $0x40] sm:$0xff]  ;;  %v771_v43 = vadd.f32 %v1830_v36, %v511_v35  ;;  %v712_v46 = vpop.f32.mrb[27].mxu1  ;;  %1868 = vmatprep.subr.bf16.mxu1 %v2092_v42  ;;  %v2348_v53 = vpop.f32.mrb[26].mxu0  ;;  %v514_v2 = vld [vmem:[#allocation2 + $0x90] sm:$0xff] }
 0x121   : > { %v1096_v48 = vadd.f32 %v1025_v8, %v836_v41  ;;  %792 = vst.msk [vmem:[#allocation2 + $0x60] sm:$0xff] %vm447_vm7, %v768_v34  ;;  %v839_v49 = vld [vmem:[#allocation2 + $0x58] sm:$0xff]  ;;  %v769_v50 = vadd.f32 %v712_v46, %v509_v45  ;;  %1903 = vmatpush1.bf16.msra.mxu0 %v1902_v37  ;;  %v2350_v54 = vld [vmem:[#allocation2 + $0x30] sm:$0xff]  ;;  %v2355_v57 = vpop.f32.mrb[27].mxu0 }
 0x122   : > { %1122 = vst.msk [vmem:[#allocation2 + $0x50] sm:$0xff] %vm447_vm7, %v1098_v40  ;;  %v1099_v55 = vadd.f32 %v1852_v12, %v839_v49  ;;  %795 = vst.msk [vmem:[#allocation2 + $0x78] sm:$0xff] %vm447_vm7, %v771_v43  ;;  %v837_v56 = vld [vmem:[#allocation2 + $0x48] sm:$0xff]  ;;  %1904 = vmatprep.subr.bf16.mxu0 %v2092_v42  ;;  %v1140_v58 = vld [vmem:[#allocation2 + $0x20] sm:$0xff]  ;;  %v1730_v59 = vpack.c.bf16 %v2350_v54, %v2350_v54  ;;  %v1402_v28 = vmul.f32 %v2350_v54, %v2350_v54 }
 0x123   : > { %1120 = vst.msk [vmem:[#allocation2 + $0x40] sm:$0xff] %vm447_vm7, %v1096_v48  ;;  %v1097_v60 = vadd.f32 %v1028_v16, %v837_v56  ;;  %793 = vst.msk [vmem:[#allocation2 + $0x68] sm:$0xff] %vm447_vm7, %v769_v50  ;;  %1870 = vmatpush1.bf16.msra.mxu1 %v1869_v51  ;;  %v1728_v62 = vpack.c.bf16 %v1140_v58, %v1140_v58  ;;  %v1143_v63 = vld [vmem:[#allocation2 + $0x38] sm:$0xff]  ;;  %v1400_v6 = vmul.f32 %v1140_v58, %v1140_v58  ;;  %v518_v43 = vld [vmem:[#allocation2 + $0xb0] sm:$0xff] }
 0x124   : > { %1123 = vst.msk [vmem:[#allocation2 + $0x58] sm:$0xff] %vm447_vm7, %v1099_v55  ;;  %1871 = vmatprep.subr.bf16.mxu1 %v2092_v42  ;;  %v1731_v1 = vpack.c.bf16 %v1143_v63, %v1143_v63  ;;  %v1403_v17 = vmul.f32 %v1143_v63, %v1143_v63  ;;  %v1875_v27 = vpack.c.bf16 %v1143_v63, %v2350_v54  ;;  %v516_v51 = vld [vmem:[#allocation2 + $0xa0] sm:$0xff] }
 0x125   : > { %v1141_v0 = vld [vmem:[#allocation2 + $0x28] sm:$0xff]  ;;  %1263 = vst.msk [vmem:[%s2322_s19 + $0x18] sm:$0xf] %vm1256_vm8, %v1730_v59  ;;  %v1833_v3 = vpop.f32.mrb[28].mxu1  ;;  %1906 = vmatpush1.bf16.msra.mxu0 %v1905_v61  ;;  %1261 = vst.msk [vmem:[%s2322_s19 + $0x10] sm:$0xf] %vm1256_vm8, %v1728_v62 }
 0x126   : > { %1121 = vst.msk [vmem:[#allocation2 + $0x48] sm:$0xff] %vm447_vm7, %v1097_v60  ;;  %v1729_v4 = vpack.c.bf16 %v1141_v0, %v1141_v0  ;;  %v1872_v5 = vpack.c.bf16 %v1141_v0, %v1140_v58  ;;  %v1401_v7 = vmul.f32 %v1141_v0, %v1141_v0  ;;  %v774_v8 = vadd.f32 %v1833_v3, %v514_v2  ;;  %v725_v10 = vpop.f32.mrb[29].mxu1  ;;  %v2373_v16 = vpop.f32.mrb[28].mxu0 }
 0x127   : > { %1907 = vmatprep.subr.bf16.mxu0 %v2092_v42  ;;  %1264 = vst.msk [vmem:[%s2322_s19 + $0x1c] sm:$0xf] %vm1256_vm8, %v1731_v1  ;;  %v842_v11 = vld [vmem:[#allocation2 + $0x70] sm:$0xff]  ;;  %v772_v12 = vadd.f32 %v725_v10, %v512_v9  ;;  %v1834_v14 = vpop.f32.mrb[30].mxu1  ;;  %v1057_v23 = vpop.f32.mrb[29].mxu0  ;;  %v1911_v37 = vpack.c.bf16 %v1403_v17, %v1402_v28  ;;  %v517_v1 = vld [vmem:[#allocation2 + $0xa8] sm:$0xff] }
 0x128   : > { %1262 = vst.msk [vmem:[%s2322_s19 + $0x14] sm:$0xf] %vm1256_vm8, %v1729_v4  ;;  %1873 = vmatpush1.bf16.msra.mxu1 %v1872_v5  ;;  %v1908_v15 = vpack.c.bf16 %v1401_v7, %v1400_v6  ;;  %v1102_v18 = vadd.f32 %v1855_v38, %v842_v11  ;;  %v840_v19 = vld [vmem:[#allocation2 + $0x60] sm:$0xff]  ;;  %v775_v20 = vadd.f32 %v1834_v14, %v515_v13  ;;  %v728_v22 = vpop.f32.mrb[31].mxu1  ;;  %v2381_v29 = vpop.f32.mrb[30].mxu0 }
 0x129   : > { %798 = vst.msk [vmem:[#allocation2 + $0x90] sm:$0xff] %vm447_vm7, %v774_v8  ;;  %1874 = vmatprep.subr.bf16.mxu1 %v2092_v42  ;;  %v1100_v24 = vadd.f32 %v1041_v47, %v840_v19  ;;  %796 = vst.msk [vmem:[#allocation2 + $0x80] sm:$0xff] %vm447_vm7, %v772_v12  ;;  %v843_v25 = vld [vmem:[#allocation2 + $0x78] sm:$0xff]  ;;  %v773_v26 = vadd.f32 %v728_v22, %v513_v21  ;;  %v2383_v30 = vld [vmem:[#allocation2 + $0x50] sm:$0xff]  ;;  %v2389_v33 = vpop.f32.mrb[31].mxu0 }
 0x12a   : > { %1909 = vmatpush1.bf16.msra.mxu0 %v1908_v15  ;;  %1126 = vst.msk [vmem:[#allocation2 + $0x70] sm:$0xff] %vm447_vm7, %v1102_v18  ;;  %v1103_v31 = vadd.f32 %v2348_v53, %v843_v25  ;;  %799 = vst.msk [vmem:[#allocation2 + $0x98] sm:$0xff] %vm447_vm7, %v775_v20  ;;  %v841_v32 = vld [vmem:[#allocation2 + $0x68] sm:$0xff]  ;;  %v1144_v34 = vld [vmem:[#allocation2 + $0x40] sm:$0xff]  ;;  %v1734_v35 = vpack.c.bf16 %v2383_v30, %v2383_v30  ;;  %v2407_v53 = vmul.u32.u64.low 2863311531, %v2260_v44  ;;  %v2408_v54 = vmul.u32.u64.high 2863311531, %v2260_v44, %v2407_v53 }
 0x12b   : > { %1910 = vmatprep.subr.bf16.mxu0 %v2092_v42  ;;  %1124 = vst.msk [vmem:[#allocation2 + $0x60] sm:$0xff] %vm447_vm7, %v1100_v24  ;;  %v1101_v36 = vadd.f32 %v2355_v57, %v841_v32  ;;  %797 = vst.msk [vmem:[#allocation2 + $0x88] sm:$0xff] %vm447_vm7, %v773_v26  ;;  %v1732_v38 = vpack.c.bf16 %v1144_v34, %v1144_v34  ;;  %v1147_v39 = vld [vmem:[#allocation2 + $0x58] sm:$0xff]  ;;  %v1404_v48 = vmul.f32 %v1144_v34, %v1144_v34 }
 0x12c   : > { %1876 = vmatpush1.bf16.msra.mxu1 %v1875_v27  ;;  %1127 = vst.msk [vmem:[#allocation2 + $0x78] sm:$0xff] %vm447_vm7, %v1103_v31  ;;  %v1735_v41 = vpack.c.bf16 %v1147_v39, %v1147_v39  ;;  %v519_v57 = vld [vmem:[#allocation2 + $0xb8] sm:$0xff]  ;;  %v1407_v61 = vmul.f32 %v1147_v39, %v1147_v39  ;;  %v1881_v7 = vpack.c.bf16 %v1147_v39, %v2383_v30  ;;  %v1290_v26 = vshrl.u32 %v2408_v54, 4 }
 0x12d   : > { %1877 = vmatprep.subr.bf16.mxu1 %v2092_v42  ;;  %v1145_v40 = vld [vmem:[#allocation2 + $0x48] sm:$0xff]  ;;  %1267 = vst.msk [vmem:[%s2322_s19 + $0x28] sm:$0xf] %vm1256_vm8, %v1734_v35  ;;  %v1837_v45 = vpop.f32.mrb[32].mxu1  ;;  %1265 = vst.msk [vmem:[%s2322_s19 + $0x20] sm:$0xf] %vm1256_vm8, %v1732_v38  ;;  %v1406_v8 = vmul.f32 %v2383_v30, %v2383_v30 }
 0x12e   : > { %1125 = vst.msk [vmem:[#allocation2 + $0x68] sm:$0xff] %vm447_vm7, %v1101_v36  ;;  %1912 = vmatpush1.bf16.msra.mxu0 %v1911_v37  ;;  %v1733_v46 = vpack.c.bf16 %v1145_v40, %v1145_v40  ;;  %v1878_v47 = vpack.c.bf16 %v1145_v40, %v1144_v34  ;;  %v1405_v49 = vmul.f32 %v1145_v40, %v1145_v40  ;;  %v741_v52 = vpop.f32.mrb[33].mxu1  ;;  %v1863_v60 = vpop.f32.mrb[32].mxu0 }
 0x12f   : > { %v778_v50 = vadd.f32 %v1837_v45, %v518_v43  ;;  %1913 = vmatprep.subr.bf16.mxu0 %v2092_v42  ;;  %1268 = vst.msk [vmem:[%s2322_s19 + $0x2c] sm:$0xf] %vm1256_vm8, %v1735_v41  ;;  %v776_v56 = vadd.f32 %v741_v52, %v516_v51  ;;  %v1838_v58 = vpop.f32.mrb[34].mxu1  ;;  %v1073_v3 = vpop.f32.mrb[33].mxu0  ;;  %v1917_v17 = vpack.c.bf16 %v1407_v61, %v1406_v8  ;;  %v1291_v41 = vmul.u32 24, %v1290_v26 }
 0x130   : > { %v846_v55 = vld [vmem:[#allocation2 + $0x90] sm:$0xff]  ;;  %1266 = vst.msk [vmem:[%s2322_s19 + $0x24] sm:$0xf] %vm1256_vm8, %v1733_v46  ;;  %1879 = vmatpush1.bf16.msra.mxu1 %v1878_v47  ;;  %v1914_v59 = vpack.c.bf16 %v1405_v49, %v1404_v48  ;;  %v844_v63 = vld [vmem:[#allocation2 + $0x80] sm:$0xff]  ;;  %v779_v0 = vadd.f32 %v1838_v58, %v519_v57  ;;  %v744_v2 = vpop.f32.mrb[35].mxu1  ;;  %v1864_v9 = vpop.f32.mrb[34].mxu0 }
 0x131   : > { %v1106_v62 = vadd.f32 %v2373_v16, %v846_v55  ;;  %802 = vst.msk [vmem:[#allocation2 + $0xb0] sm:$0xff] %vm447_vm7, %v778_v50  ;;  %1880 = vmatprep.subr.bf16.mxu1 %v2092_v42  ;;  %v1104_v4 = vadd.f32 %v1057_v23, %v844_v63  ;;  %800 = vst.msk [vmem:[#allocation2 + $0xa0] sm:$0xff] %vm447_vm7, %v776_v56  ;;  %v847_v5 = vld [vmem:[#allocation2 + $0x98] sm:$0xff]  ;;  %v777_v6 = vadd.f32 %v744_v2, %v517_v1  ;;  %v1150_v10 = vld [vmem:[#allocation2 + $0x70] sm:$0xff]  ;;  %v1076_v13 = vpop.f32.mrb[35].mxu0 }
 0x132   : > { %1915 = vmatpush1.bf16.msra.mxu0 %v1914_v59  ;;  %v1107_v11 = vadd.f32 %v2381_v29, %v847_v5  ;;  %803 = vst.msk [vmem:[#allocation2 + $0xb8] sm:$0xff] %vm447_vm7, %v779_v0  ;;  %v845_v12 = vld [vmem:[#allocation2 + $0x88] sm:$0xff]  ;;  %v1148_v14 = vld [vmem:[#allocation2 + $0x60] sm:$0xff]  ;;  %v1738_v15 = vpack.c.bf16 %v1150_v10, %v1150_v10  ;;  %v1410_v35 = vmul.f32 %v1150_v10, %v1150_v10 }
 0x133   : > { %1130 = vst.msk [vmem:[#allocation2 + $0x90] sm:$0xff] %vm447_vm7, %v1106_v62  ;;  %1916 = vmatprep.subr.bf16.mxu0 %v2092_v42  ;;  %1128 = vst.msk [vmem:[#allocation2 + $0x80] sm:$0xff] %vm447_vm7, %v1104_v4  ;;  %v1105_v16 = vadd.f32 %v2389_v33, %v845_v12  ;;  %v1736_v18 = vpack.c.bf16 %v1148_v14, %v1148_v14  ;;  %v1151_v19 = vld [vmem:[#allocation2 + $0x78] sm:$0xff]  ;;  %v1408_v24 = vmul.f32 %v1148_v14, %v1148_v14 }
 0x134   : > { %801 = vst.msk [vmem:[#allocation2 + $0xa8] sm:$0xff] %vm447_vm7, %v777_v6  ;;  %1882 = vmatpush1.bf16.msra.mxu1 %v1881_v7  ;;  %1131 = vst.msk [vmem:[#allocation2 + $0x98] sm:$0xff] %vm447_vm7, %v1107_v11  ;;  %v1739_v21 = vpack.c.bf16 %v1151_v19, %v1151_v19  ;;  %v1411_v29 = vmul.f32 %v1151_v19, %v1151_v19  ;;  %v1887_v34 = vpack.c.bf16 %v1151_v19, %v1150_v10 }
 0x135   : > { %1883 = vmatprep.subr.bf16.mxu1 %v2092_v42  ;;  %v1149_v20 = vld [vmem:[#allocation2 + $0x68] sm:$0xff]  ;;  %1271 = vst.msk [vmem:[%s2322_s19 + $0x38] sm:$0xf] %vm1256_vm8, %v1738_v15  ;;  %1269 = vst.msk [vmem:[%s2322_s19 + $0x30] sm:$0xf] %vm1256_vm8, %v1736_v18  ;;  %v1292_v54 = vsub.s32 %v2260_v44, %v1291_v41 }
 0x136   : > { %1129 = vst.msk [vmem:[#allocation2 + $0x88] sm:$0xff] %vm447_vm7, %v1105_v16  ;;  %1918 = vmatpush1.bf16.msra.mxu0 %v1917_v17  ;;  %v1737_v22 = vpack.c.bf16 %v1149_v20, %v1149_v20  ;;  %v1884_v23 = vpack.c.bf16 %v1149_v20, %v1148_v14  ;;  %v1409_v25 = vmul.f32 %v1149_v20, %v1149_v20 }
 0x137   : > { %1919 = vmatprep.subr.bf16.mxu0 %v2092_v42  ;;  %1272 = vst.msk [vmem:[%s2322_s19 + $0x3c] sm:$0xf] %vm1256_vm8, %v1739_v21  ;;  %v1923_v45 = vpack.c.bf16 %v1411_v29, %v1410_v35  ;;  %vm1306_vm9 = vcmp.ne.s32.totalorder %v1292_v54, 0  ;;  %vm1308_vm10 = vcmp.lt.s32.totalorder %v1292_v54, 0  ;;  %v1312_v2 = vadd.s32 24, %v1292_v54 }
 0x138   : > { %v850_v27 = vld [vmem:[#allocation2 + $0xb0] sm:$0xff]  ;;  %1270 = vst.msk [vmem:[%s2322_s19 + $0x34] sm:$0xf] %vm1256_vm8, %v1737_v22  ;;  %1885 = vmatpush1.bf16.msra.mxu1 %v1884_v23  ;;  %v1920_v28 = vpack.c.bf16 %v1409_v25, %v1408_v24  ;;  %v848_v31 = vld [vmem:[#allocation2 + $0xa0] sm:$0xff]  ;;  %vm1310_vm11 = vmand %vm1308_vm10, %vm1306_vm9 }
 0x139   : > { %v1110_v30 = vadd.f32 %v1863_v60, %v850_v27  ;;  %1886 = vmatprep.subr.bf16.mxu1 %v2092_v42  ;;  %v1108_v32 = vadd.f32 %v1073_v3, %v848_v31  ;;  %v851_v33 = vld [vmem:[#allocation2 + $0xb8] sm:$0xff] }
 0x13a   : > { %1921 = vmatpush1.bf16.msra.mxu0 %v1920_v28  ;;  %v1154_v36 = vld [vmem:[#allocation2 + $0x90] sm:$0xff]  ;;  %v1111_v37 = vadd.f32 %v1864_v9, %v851_v33  ;;  %v1152_v39 = vld [vmem:[#allocation2 + $0x80] sm:$0xff]  ;;  %v1314_v9 = vsel %vm1310_vm11, %v1312_v2, %v1292_v54 }
 0x13b   : > { %1134 = vst.msk [vmem:[#allocation2 + $0xb0] sm:$0xff] %vm447_vm7, %v1110_v30  ;;  %v849_v38 = vld [vmem:[#allocation2 + $0xa8] sm:$0xff]  ;;  %1922 = vmatprep.subr.bf16.mxu0 %v2092_v42  ;;  %v1742_v40 = vpack.c.bf16 %v1154_v36, %v1154_v36  ;;  %1132 = vst.msk [vmem:[#allocation2 + $0xa0] sm:$0xff] %vm447_vm7, %v1108_v32  ;;  %v1740_v46 = vpack.c.bf16 %v1152_v39, %v1152_v39  ;;  %v1155_v47 = vld [vmem:[#allocation2 + $0x98] sm:$0xff]  ;;  %v1412_v52 = vmul.f32 %v1152_v39, %v1152_v39 }
 0x13c   : > { %v1109_v43 = vadd.f32 %v1076_v13, %v849_v38  ;;  %1888 = vmatpush1.bf16.msra.mxu1 %v1887_v34  ;;  %1135 = vst.msk [vmem:[#allocation2 + $0xb8] sm:$0xff] %vm447_vm7, %v1111_v37  ;;  %v1743_v49 = vpack.c.bf16 %v1155_v47, %v1155_v47  ;;  %v1415_v56 = vmul.f32 %v1155_v47, %v1155_v47  ;;  %vm1316_vm12 = vcmp.lt.s32.totalorder %v1314_v9, 16 }
 0x13d   : > { %1889 = vmatprep.subr.bf16.mxu1 %v2092_v42  ;;  %v1153_v48 = vld [vmem:[#allocation2 + $0x88] sm:$0xff]  ;;  %1275 = vst.msk [vmem:[%s2322_s19 + $0x48] sm:$0xf] %vm1256_vm8, %v1742_v40  ;;  %1273 = vst.msk [vmem:[%s2322_s19 + $0x40] sm:$0xf] %vm1256_vm8, %v1740_v46  ;;  %v1893_v57 = vpack.c.bf16 %v1155_v47, %v1154_v36  ;;  %v1414_v58 = vmul.f32 %v1154_v36, %v1154_v36  ;;  %v2094_v13 = vmov 1.0  }
 0x13e   : > { %1133 = vst.msk [vmem:[#allocation2 + $0xa8] sm:$0xff] %vm447_vm7, %v1109_v43  ;;  %1924 = vmatpush1.bf16.msra.mxu0 %v1923_v45  ;;  %v1741_v50 = vpack.c.bf16 %v1153_v48, %v1153_v48  ;;  %v1890_v51 = vpack.c.bf16 %v1153_v48, %v1152_v39  ;;  %v1413_v53 = vmul.f32 %v1153_v48, %v1153_v48 }
 0x13f   : > { %1925 = vmatprep.subr.bf16.mxu0 %v2092_v42  ;;  %1276 = vst.msk [vmem:[%s2322_s19 + $0x4c] sm:$0xf] %vm1256_vm8, %v1743_v49  ;;  %v1929_v44 = vpack.c.bf16 %v1415_v56, %v1414_v58 }
 0x140   : > { %1274 = vst.msk [vmem:[%s2322_s19 + $0x44] sm:$0xf] %vm1256_vm8, %v1741_v50  ;;  %1891 = vmatpush1.bf16.msra.mxu1 %v1890_v51  ;;  %v1926_v55 = vpack.c.bf16 %v1413_v53, %v1412_v52 }
 0x141   : > { %1892 = vmatprep.subr.bf16.mxu1 %v2092_v42 }
 0x142   : > { %1927 = vmatpush1.bf16.msra.mxu0 %v1926_v55  ;;  %v1158_v59 = vld [vmem:[#allocation2 + $0xb0] sm:$0xff]  ;;  %v1156_v60 = vld [vmem:[#allocation2 + $0xa0] sm:$0xff] }
 0x143   : > { %1928 = vmatprep.subr.bf16.mxu0 %v2092_v42  ;;  %v1746_v61 = vpack.c.bf16 %v1158_v59, %v1158_v59  ;;  %v1744_v62 = vpack.c.bf16 %v1156_v60, %v1156_v60  ;;  %v1159_v63 = vld [vmem:[#allocation2 + $0xb8] sm:$0xff]  ;;  %v1416_v5 = vmul.f32 %v1156_v60, %v1156_v60  ;;  %v1418_v11 = vmul.f32 %v1158_v59, %v1158_v59 }
 0x144   : > { %1894 = vmatpush1.bf16.msra.mxu1 %v1893_v57  ;;  %v1747_v1 = vpack.c.bf16 %v1159_v63, %v1159_v63  ;;  %v1419_v8 = vmul.f32 %v1159_v63, %v1159_v63  ;;  %v1899_v10 = vpack.c.bf16 %v1159_v63, %v1158_v59 }
 0x145   : > { %1895 = vmatprep.subr.bf16.mxu1 %v2092_v42  ;;  %v1157_v0 = vld [vmem:[#allocation2 + $0xa8] sm:$0xff]  ;;  %1279 = vst.msk [vmem:[%s2322_s19 + $0x58] sm:$0xf] %vm1256_vm8, %v1746_v61  ;;  %1277 = vst.msk [vmem:[%s2322_s19 + $0x50] sm:$0xf] %vm1256_vm8, %v1744_v62 }
 0x146   : > { %1930 = vmatpush1.bf16.msra.mxu0 %v1929_v44  ;;  %v1745_v3 = vpack.c.bf16 %v1157_v0, %v1157_v0  ;;  %v1896_v4 = vpack.c.bf16 %v1157_v0, %v1156_v60  ;;  %v1417_v6 = vmul.f32 %v1157_v0, %v1157_v0  ;;  %1280 = vst.msk [vmem:[%s2322_s19 + $0x5c] sm:$0xf] %vm1256_vm8, %v1747_v1 }
 0x147   : > { %1931 = vmatprep.subr.bf16.mxu0 %v2092_v42  ;;  %v1935_v12 = vpack.c.bf16 %v1419_v8, %v1418_v11 }
 0x148   : > { %1278 = vst.msk [vmem:[%s2322_s19 + $0x54] sm:$0xf] %vm1256_vm8, %v1745_v3  ;;  %1897 = vmatpush1.bf16.msra.mxu1 %v1896_v4  ;;  %v1932_v7 = vpack.c.bf16 %v1417_v6, %v1416_v5 }
 0x149   : > { %1898 = vmatprep.subr.bf16.mxu1 %v2092_v42 }
 0x14a   : > { %1933 = vmatpush1.bf16.msra.mxu0 %v1932_v7 }
 0x14b   : > { %1934 = vmatprep.subr.bf16.mxu0 %v2092_v42 }
 0x14c   : > { %1900 = vmatpush1.bf16.msra.mxu1 %v1899_v10 }
 0x14e   : > { %1936 = vmatpush1.bf16.msra.mxu0 %v1935_v12 }
 0x14f   : > { %1717 = vmatmul.mubr.msk.f32.vlgmr.msra.gmra.mrb[36].mxu1 %vm1316_vm12, %v2094_v13 }
 0x151   : > { %1719 = vmatmul.mubr.msk.f32.vlgmr.msra.gmra.mrb[36].mxu0 %vm1316_vm12, %v2094_v13 }
 0x222   : > { %v1392_v14 = vpop.f32.mrb[36].mxu1 }
 0x223   : > { %v1394_v15 = vpop.f32.mrb[37].mxu1 }
 0x224   : > { %v1486_v16 = vpop.f32.mrb[36].mxu0 }
 0x225   : > { %v1491_v17 = vrot.slane %v1486_v16, 7  ;;  %v1488_v18 = vpop.f32.mrb[37].mxu0 }
 0x227   : > { %v1494_v42 = vsel %vm1493_vm13, %v1392_v14, %v1491_v17 }
 0x228   : > { %1496 = vst.msk [vmem:[%s172_s26] sm:$0x3] %vm1495_vm14, %v1494_v42 }
 0x229   : > { %2041 = shalt.err (!%p2038_p4)
}
 0x22a   : > { %s2042_s8 = scalar_lea.hbm %s2477_s30, 32  ;;  %s2046_s11 = scalar_lea.hbm %s2522_s3, 128 }
 0x22b   : > { %p2043_p7 = scmp.ne.s32.totalorder %s2477_s30, %s2042_s8  ;;  %p2047_p10 = scmp.lt.u32.totalorder %s2477_s30, %s2522_s3 }
 0x22c   : > { %p2048_p11 = scmp.lt.u32.totalorder %s2046_s11, %s2042_s8  ;;  %p2050_p13 = scmp.lt.u32.totalorder %s2042_s8, %s2477_s30 }
 0x22d   : > { %p2044_p8 = pnand %p2043_p7, %p2154_p5 }
 0x22e   : > { %p2049_p12 = por %p2048_p11, %p2047_p10 }
 0x22f   : > { %p2045_p9 = pneg %p2044_p8 }
 0x230   : > { %p2051_p0 = por %p2050_p13, %p2049_p12 }
 0x232   : > { %p2052_p1 = pnand %p2051_p0, %p2045_p9 }
 0x234   : > { %2055 = shalt.err (!%p2052_p1)
}
 0x235   : > { %1947 = dma.vmem_to_hbm [thread:$0]  (%p2154_p5), %s2479_s27, 32, %s2477_s30, %s1503_s16  }
 0x236 PF: > { %p1953_p2 = scmp.ge.s32.totalorder %s2090_s15, 2  ;;  %s1540_s20 = sand.u32 1, %s2078_s12  }
 0x237   : > { %s1541_s24 = scalar_lea.sflag [#allocation4], %s1540_s20 }
 0x238   : > { %p1950_p3 = pnand %p1953_p2, %p2158_p6 }
 0x23a   : > { %2073 = dma.done.wait (!%p1950_p3), %s1541_s24, 32  }
 0x23b   : > { %2075 = vsyncadd (!%p1950_p3), %s1541_s24, 4294967264  ;;  %p14_p4 = scmp.ge.s32.totalorder %s2141_s18, 6   ;;  %s2526_s12 = smov %s2082_s13 }
 0x23c   : > { %s2527_s13 = smov %s2086_s14  ;;  %s2528_s14 = smov %s2152_s21 }
 0x23d   : > { %s2529_s15 = smov %s2141_s18  ;;  %16 = sbr.rel (!%p14_p4) target bundleno = 3 (0x3), region = 77 }
 0x244   :  { %1546 = vsyncpa [#allocation4], 1 }
 0x245   :  { %1548 = vsyncpa [#allocation4 + $0x1], 1 }

</bundles_post_ra>
